<compile_context>
chip_gen: v7x
topology: tpu7x:2x2x1
jax: 0.10.0
libtpu: 0.0.40
codegen_flags: <defaults>
</compile_context>

<pallas_src>
import functools
import math

import jax
import jax.numpy as jnp
from jax import lax
from jax.experimental import pallas as pl
from jax.experimental.pallas import tpu as pltpu

_PACK_ROWS = 16  # one bf16 vreg spans 16 sublane-packed rows -> weight-block alignment


def _attention_kernel(xs_ref, xt_ref, w_ref, rel_ref, *ctx_refs,
                      B, Sq, Sk, Din, Dp, H, inv_total, compute_context):
    xs = xs_ref[...]                      # (B*Sq, Din) bf16
    xt = xt_ref[...]                      # (B*Sk, Din) bf16

    # Carve the packed parameter slab with static ref slices (zero cost; every
    # weight block starts on a 16-row bf16 tile boundary).
    wq = w_ref[0:Din, :]                  # (Din, H) bf16, 1/sqrt(H) pre-folded
    wk = w_ref[Dp:Dp + Din, :]            # (Din, H) bf16
    bias_row = 3 * Dp
    bq = w_ref[bias_row + 0:bias_row + 1, :].astype(jnp.float32)   # (1, H)
    bk = w_ref[bias_row + 1:bias_row + 2, :].astype(jnp.float32)   # (1, H)

    # bf16 MXU projections, f32 accumulation; batch flattened into the M dim.
    q = jnp.dot(xs, wq, preferred_element_type=jnp.float32) + bq   # (B*Sq, H) f32
    k = jnp.dot(xt, wk, preferred_element_type=jnp.float32) + bk   # (B*Sk, H) f32

    qb = q.reshape(B, Sq, H)
    kb = k.reshape(B, Sk, H)

    # scores[b, i, j] = sum_h q[b, i, h] * k[b, j, h]   (no explicit k.T / XLU transpose)
    scores = lax.dot_general(
        qb, kb,
        dimension_numbers=(((2,), (2,)), ((0,), (0,))),
        preferred_element_type=jnp.float32)            # (B, Sq, Sk) f32

    # Numerically stable softmax over the last dim, all f32 (v5e-safe elementwise).
    m = jnp.max(scores, axis=-1, keepdims=True)
    e = jnp.exp(scores - m)
    denom = jnp.sum(e, axis=-1, keepdims=True)
    probs = e / denom                                  # exact divide (per review)

    # relevance = mean(attn_probs); scalar store into the SMEM output.
    rel_ref[0, 0] = jnp.sum(probs) * inv_total

    if compute_context:
        # Context is torch-internal (unused by the module's return); only built on
        # the verification path.  Separate V dot avoids non-128-aligned lane slices.
        wv = w_ref[2 * Dp:2 * Dp + Din, :]
        bv = w_ref[bias_row + 2:bias_row + 3, :].astype(jnp.float32)
        v = jnp.dot(xt, wv, preferred_element_type=jnp.float32) + bv
        vb = v.reshape(B, Sk, H)
        ctx = lax.dot_general(
            probs, vb,
            dimension_numbers=(((2,), (1,)), ((0,), (0,))),
            preferred_element_type=jnp.float32)        # (B, Sq, H)
        ctx_refs[0][...] = ctx.astype(ctx_refs[0].dtype)


def prepare_attention_params(params):
    """One-time parameter prep (outside the per-call hot path):
       * fold 1/sqrt(H) into Wq/bq,
       * pack all six Linear params into ONE bf16 slab so the kernel takes a single
         constant operand (3 input DMAs total).  Slab rows:
         [0:Dp)=wq*scale, [Dp:2Dp)=wk, [2Dp:3Dp)=wv, rows 3Dp..3Dp+2 = bq*scale,bk,bv."""
    wq, bq, wk, bk, wv, bv = params
    Din, H = wq.shape
    scale = 1.0 / math.sqrt(float(H))
    Dp = ((Din + _PACK_ROWS - 1) // _PACK_ROWS) * _PACK_ROWS

    def block(w):
        return jnp.pad(w, ((0, Dp - Din), (0, 0)))

    slab = jnp.concatenate([
        block(wq * scale),
        block(wk),
        block(wv),
        jnp.reshape(bq * scale, (1, H)),
        jnp.reshape(bk, (1, H)),
        jnp.reshape(bv, (1, H)),
    ], axis=0).astype(jnp.bfloat16)

    return {"slab": slab, "hidden_dim": H, "input_dim": Din, "padded_dim": Dp}


def attention_module_forward(student_obs, teacher_obs, prepared, *, compute_context=False):
    """Returns `relevance` (the module's output); with compute_context=True also
       returns the (torch-internal, unused) context tensor for verification."""
    B, Sq, Din = student_obs.shape
    Bt, Sk, Dint = teacher_obs.shape
    assert Bt == B and Dint == Din and Din == prepared["input_dim"]
    H = prepared["hidden_dim"]
    Dp = prepared["padded_dim"]

    # Flatten batch into the matmul M dim; cast to bf16 for the MXU (replaces the
    # previous f32 astype, so no extra wrapper op and half the operand DMA bytes).
    xs = student_obs.reshape(B * Sq, Din).astype(jnp.bfloat16)
    xt = teacher_obs.reshape(B * Sk, Din).astype(jnp.bfloat16)

    out_shape = [jax.ShapeDtypeStruct((1, 1), jnp.float32)]
    out_specs = [pl.BlockSpec(memory_space=pltpu.SMEM)]
    if compute_context:
        out_shape.append(jax.ShapeDtypeStruct((B, Sq, H), jnp.float32))
        out_specs.append(pl.BlockSpec(memory_space=pltpu.VMEM))
        # TODO(synk): if ctx ever becomes hot, present it lane-dense as (B, Sq*H).

    kernel = functools.partial(
        _attention_kernel,
        B=B, Sq=Sq, Sk=Sk, Din=Din, Dp=Dp, H=H,
        inv_total=1.0 / float(B * Sq * Sk),
        compute_context=compute_context)

    # Single grid-less invocation; the whole (few-KiB) problem is VMEM-resident.
    # TODO(synk): when scaling Sq/Sk/Din/H, add a ("parallel",) batch grid axis (so
    # v7x's 2 TCs split work), size tiles in 256-multiples for the v6e/v7x MXU,
    # re-derive block sizes against v7x's 64 MiB physical / 32 MiB scoped VMEM
    # (BlockSpec double-buffers each input), and set vmem_limit_bytes explicitly.
    outs = pl.pallas_call(
        kernel,
        out_shape=tuple(out_shape),
        out_specs=tuple(out_specs),
    )(xs, xt, prepared["slab"])

    rel = outs[0][0, 0]
    if compute_context:
        return rel, outs[1]
    return rel


def _reference(student_obs, teacher_obs, params):
    wq, bq, wk, bk, wv, bv = params
    q = student_obs @ wq + bq
    k = teacher_obs @ wk + bk
    v = teacher_obs @ wv + bv
    scores = jnp.einsum("bqh,bkh->bqk", q, k) / math.sqrt(q.shape[-1])
    probs = jax.nn.softmax(scores, axis=-1)
    ctx = jnp.einsum("bqk,bkh->bqh", probs, v)
    return jnp.mean(probs), ctx


if __name__ == "__main__":
    B, Sq, Sk, Din, H = 2, 8, 8, 16, 32

    key = jax.random.PRNGKey(0)
    ks = jax.random.split(key, 8)
    # Deterministic PyTorch-Linear-style init: U(-1/sqrt(in), 1/sqrt(in)).
    bound = 1.0 / math.sqrt(Din)
    wq = jax.random.uniform(ks[0], (Din, H), jnp.float32, -bound, bound)
    bq = jax.random.uniform(ks[1], (1, H), jnp.float32, -bound, bound)
    wk = jax.random.uniform(ks[2], (Din, H), jnp.float32, -bound, bound)
    bk = jax.random.uniform(ks[3], (1, H), jnp.float32, -bound, bound)
    wv = jax.random.uniform(ks[4], (Din, H), jnp.float32, -bound, bound)
    bv = jax.random.uniform(ks[5], (1, H), jnp.float32, -bound, bound)
    params = (wq, bq, wk, bk, wv, bv)

    student_obs = jax.random.normal(ks[6], (B, Sq, Din), jnp.float32)
    teacher_obs = jax.random.normal(ks[7], (B, Sq, Din), jnp.float32)

    prepared = prepare_attention_params(params)

    # Default fast path: module semantics (relevance only; no V/context work).
    relevance = attention_module_forward(student_obs, teacher_obs, prepared)
    relevance = jax.block_until_ready(relevance)

    # Verification path: also compute the context the torch forward builds internally.
    relevance2, context = attention_module_forward(
        student_obs, teacher_obs, prepared, compute_context=True)
    jax.block_until_ready(context)

    ref_rel, ref_ctx = _reference(student_obs, teacher_obs, params)

    # relevance = mean(softmax) is analytically 1/Sk; with the exact divide the only
    # error is f32 rounding, so the tolerance is tight now (per review).
    assert abs(float(relevance) - float(ref_rel)) < 1e-4, (float(relevance), float(ref_rel))
    assert abs(float(relevance2) - float(ref_rel)) < 1e-4, (float(relevance2), float(ref_rel))
    # Context tolerance accounts for bf16 MXU operands vs. the f32 reference.
    assert bool(jnp.allclose(context, ref_ctx, atol=2e-2, rtol=2e-2)), "context mismatch"

    print("KERNEL_OK")
</pallas_src>

<mosaic_0001>
module attributes {stable_mosaic.version = 11 : i64} {
  func.func @_attention_kernel(%arg0: memref<16x16xbf16, #tpu.memory_space<vmem>>, %arg1: memref<16x16xbf16, #tpu.memory_space<vmem>>, %arg2: memref<51x32xbf16, #tpu.memory_space<vmem>>, %arg3: memref<1x1xf32, #tpu.memory_space<smem>>) attributes {dimension_semantics = [], scalar_prefetch = 0 : i64, scratch_operands = 0 : i64, tpu.core_type = #tpu.core_type<tc>} {
    %c0 = arith.constant 0 : index
    %c0_0 = arith.constant 0 : index
    %0 = vector.load %arg0[%c0, %c0_0] : memref<16x16xbf16, #tpu.memory_space<vmem>>, vector<16x16xbf16>
    %c0_1 = arith.constant 0 : index
    %c0_2 = arith.constant 0 : index
    %1 = vector.load %arg1[%c0_1, %c0_2] : memref<16x16xbf16, #tpu.memory_space<vmem>>, vector<16x16xbf16>
    %c0_3 = arith.constant 0 : index
    %c0_4 = arith.constant 0 : index
    %2 = vector.load %arg2[%c0_3, %c0_4] : memref<51x32xbf16, #tpu.memory_space<vmem>>, vector<16x32xbf16>
    %c16 = arith.constant 16 : index
    %c0_5 = arith.constant 0 : index
    %3 = vector.load %arg2[%c16, %c0_5] : memref<51x32xbf16, #tpu.memory_space<vmem>>, vector<16x32xbf16>
    %c48 = arith.constant 48 : index
    %c0_6 = arith.constant 0 : index
    %4 = vector.load %arg2[%c48, %c0_6] : memref<51x32xbf16, #tpu.memory_space<vmem>>, vector<1x32xbf16>
    %5 = arith.extf %4 : vector<1x32xbf16> to vector<1x32xf32>
    %c49 = arith.constant 49 : index
    %c0_7 = arith.constant 0 : index
    %6 = vector.load %arg2[%c49, %c0_7] : memref<51x32xbf16, #tpu.memory_space<vmem>>, vector<1x32xbf16>
    %7 = arith.extf %6 : vector<1x32xbf16> to vector<1x32xf32>
    %cst = arith.constant dense<0.000000e+00> : vector<16x32xf32>
    %8 = tpu.matmul %0, %2, %cst {dimension_numbers = #tpu.dot_dimension_numbers<[1], [0], [0], [1], [0, 0, 1, 1], [], []>} : vector<16x16xbf16>, vector<16x32xbf16>, vector<16x32xf32> -> vector<16x32xf32>
    %9 = vector.broadcast %5 : vector<1x32xf32> to vector<16x32xf32>
    %10 = arith.addf %8, %9 : vector<16x32xf32>
    %cst_8 = arith.constant dense<0.000000e+00> : vector<16x32xf32>
    %11 = tpu.matmul %1, %3, %cst_8 {dimension_numbers = #tpu.dot_dimension_numbers<[1], [0], [0], [1], [0, 0, 1, 1], [], []>} : vector<16x16xbf16>, vector<16x32xbf16>, vector<16x32xf32> -> vector<16x32xf32>
    %12 = vector.broadcast %7 : vector<1x32xf32> to vector<16x32xf32>
    %13 = arith.addf %11, %12 : vector<16x32xf32>
    %14 = vector.shape_cast %10 : vector<16x32xf32> to vector<2x8x32xf32>
    %15 = vector.shape_cast %13 : vector<16x32xf32> to vector<2x8x32xf32>
    %cst_9 = arith.constant dense<0.000000e+00> : vector<2x8x8xf32>
    %16 = tpu.matmul %14, %15, %cst_9 {dimension_numbers = #tpu.dot_dimension_numbers<[2], [2], [1], [1], [0, 0, 0, 1, 1, 1], [0], [0]>} : vector<2x8x32xf32>, vector<2x8x32xf32>, vector<2x8x8xf32> -> vector<2x8x8xf32>
    %cst_10 = arith.constant dense<0xFF800000> : vector<2x8xf32>
    %17 = vector.multi_reduction <maximumf>, %16, %cst_10 [2] : vector<2x8x8xf32> to vector<2x8xf32>
    %18 = vector.shape_cast %17 : vector<2x8xf32> to vector<2x8x1xf32>
    %19 = vector.broadcast %18 : vector<2x8x1xf32> to vector<2x8x8xf32>
    %20 = arith.subf %16, %19 : vector<2x8x8xf32>
    %21 = math.exp %20 : vector<2x8x8xf32>
    %cst_11 = arith.constant dense<0.000000e+00> : vector<2x8xf32>
    %22 = vector.multi_reduction <add>, %21, %cst_11 [2] : vector<2x8x8xf32> to vector<2x8xf32>
    %23 = vector.shape_cast %22 : vector<2x8xf32> to vector<2x8x1xf32>
    %24 = vector.broadcast %23 : vector<2x8x1xf32> to vector<2x8x8xf32>
    %25 = arith.divf %21, %24 : vector<2x8x8xf32>
    %26 = vector.shape_cast %25 : vector<2x8x8xf32> to vector<1x2x8x8xf32>
    %cst_12 = arith.constant dense<0.000000e+00> : vector<1xf32>
    %27 = vector.multi_reduction <add>, %26, %cst_12 [1, 2, 3] : vector<1x2x8x8xf32> to vector<1xf32>
    %28 = vector.shape_cast %27 : vector<1xf32> to vector<1x1x1x1xf32>
    %29 = vector.extract %28[0, 0, 0, 0] : f32 from vector<1x1x1x1xf32>
    %cst_13 = arith.constant 7.812500e-03 : f32
    %30 = arith.mulf %29, %cst_13 : f32
    %c0_14 = arith.constant 0 : index
    %c0_15 = arith.constant 0 : index
    %31 = memref.load %arg3[%c0_14, %c0_15] : memref<1x1xf32, #tpu.memory_space<smem>>
    memref.store %30, %arg3[%c0_14, %c0_15] : memref<1x1xf32, #tpu.memory_space<smem>>
    return
  }
}

</mosaic_0001>

<bundles_post_ra>
// kernel: tpu_custom_call.1
= control target key start
LH: loop header
LB: loop body
LE: loop exit
PB: predicated region body
PF: predicated region fallthrough
CT: control target
= control target key end

     0   :  { %v418_v1 = vmov 0.0   ;;  %vm419_vm0 = vmmov 0   ;;  %vm41_vm1 = vcmask 130048   ;;  %s474_s0 = inlined_call_operand.vmem [shape: bf16[16,16], index: 0, kind: input, shape index: {}]   ;;  %s475_s1 = inlined_call_operand.vmem [shape: bf16[16,16], index: 1, kind: input, shape index: {}]   ;;  %s476_s2 = inlined_call_operand.vmem [shape: bf16[51,32], index: 2, kind: input, shape index: {}]   ;;  %s477_s3 = inlined_call_operand.hbm [shape: f32[1,1], index: 3, kind: output, shape index: {}]  }
   0x1   :  { %v394_v0 = vld [vmem:[%s476_s2 + $0x8] sm:$0xff]   ;;  %373 = vmatprep.subr.bf16.mxu1 %v418_v1  ;;  %367 = vmatprep.subr.bf16.mxu0 %v418_v1  ;;  %v395_v2 = vld [vmem:[%s476_s2] sm:$0xff]  }
   0x2   :  { %374 = vmatpush3.bf16.msra.mxu1 %v394_v0  ;;  %375 = vmatprep.mubr.msk.bf16.mxu1 %vm419_vm0, %v418_v1  ;;  %v396_v3 = vld [vmem:[%s475_s1] sm:$0xff]  }
   0x3   :  { %368 = vmatpush3.bf16.msra.mxu0 %v395_v2  ;;  %369 = vmatprep.mubr.msk.bf16.mxu0 %vm419_vm0, %v418_v1  ;;  %v397_v4 = vld [vmem:[%s474_s0] sm:$0xff]  }
   0x4   :  { %379 = vmatprep.subr.mxu0 %v418_v1  ;;  %384 = vmatprep.subr.mxu1 %v418_v1 }
   0x5   :  { %8 = vsyncpa [#allocation3], 0  ;;  %376 = vmatmul.mubr.msk.bf16.vlgmr.msra.gmra.mrb[0].mxu1 %vm41_vm1, %v396_v3  ;;  %v26_v5 = vlaneseq  ;;  %v24_v7 = vld [vmem:[%s476_s2 + $0x18] sm:$0x1]  ;;  %vm145_vm2 = vcmask 261120   ;;  %vm298_vm3 = vcmask 64512  }
   0x6   :  { %370 = vmatmul.mubr.msk.bf16.vlgmr.msra.gmra.mrb[0].mxu0 %vm41_vm1, %v397_v4  ;;  %386 = vmatprep.mubr.msk.f32.mxu1 %vm419_vm0, %v418_v1  ;;  %v25_v8 = vunpack.c.l.bf16 %v24_v7  ;;  %s406_s23 = scalar_lea.hbm %s477_s3, 16 }
   0x7   :  { %381 = vmatprep.mubr.msk.f32.mxu0 %vm419_vm0, %v418_v1  ;;  %v27_v6 = vshrl.u32 %v26_v5, 7  ;;  %p407_p0 = scmp.ne.s32.totalorder %s477_s3, %s406_s23  ;;  %p410_p1 = scmp.lt.u32.totalorder %s406_s23, %s477_s3 }
   0x9   :  { %v88_v9 = vsub.s32 1, %v27_v6  ;;  %v28_v10 = vsub.s32 0, %v27_v6  ;;  %p412_p2 = pnand %p410_p1, %p407_p0 }
   0xb   :  { %v89_v11 = vrot.slane %v25_v8, %v88_v9  ;;  %v29_v12 = vrot.slane %v25_v8, %v28_v10 }
  0xd8   :  { %v138_v13 = vpop.f32.mrb[0].mxu1 }
  0xd9   :  { %v139_v14 = vadd.f32 %v138_v13, %v89_v11  ;;  %v377_v15 = vpop.f32.mrb[1].mxu1  ;;  %v79_v16 = vpop.f32.mrb[0].mxu0 }
  0xda   :  { %v141_v17 = vpop.f32.mrb[2].mxu1  ;;  %v80_v18 = vadd.f32 %v79_v16, %v29_v12  ;;  %v371_v19 = vpop.f32.mrb[1].mxu0 }
  0xdb   :  { %v142_v20 = vadd.f32 %v141_v17, %v89_v11  ;;  %v378_v21 = vpop.f32.mrb[3].mxu1  ;;  %380 = vmatpush3.xpose.msk.msra.mxu0 %vm145_vm2, %v139_v14  ;;  %v82_v22 = vpop.f32.mrb[2].mxu0 }
  0xdc   :  { %v372_v23 = vpop.f32.mrb[3].mxu0  ;;  %v83_v24 = vadd.f32 %v82_v22, %v29_v12 }
  0xdd   :  { %385 = vmatpush3.xpose.msk.msra.mxu1 %vm145_vm2, %v142_v20 }
  0xde   :  { %382 = vmatmul.mubr.msk.f32.vlgmr.msra.gmra.mrb[4].mxu0 %vm145_vm2, %v80_v18 }
  0xe0   :  { %387 = vmatmul.mubr.msk.f32.vlgmr.msra.gmra.mrb[4].mxu1 %vm145_vm2, %v83_v24 }
 0x1b1   :  { %v218_v25 = vpop.f32.mrb[4].mxu0 }
 0x1b2   :  { %v299_v26 = vsel %vm298_vm3, %v218_v25, -inf  ;;  %v383_v27 = vpop.f32.mrb[5].mxu0 }
 0x1b3   :  { %300 = vmax.xlane.f32.xlu0 %v299_v26  ;;  %v294_v28 = vpop.f32.mrb[4].mxu1 }
 0x1b4   :  { %v388_v29 = vpop.f32.mrb[5].mxu1  ;;  %v302_v30 = vsel %vm298_vm3, %v294_v28, -inf }
 0x1b7   :  { %303 = vmax.xlane.f32.xlu0 %v302_v30 }
 0x240   :  { %v301_v31 = vpop.xlane.xlu0 %300 }
 0x241   :  { %v305_v32 = vsub.f32 %v218_v25, %v301_v31 }
 0x243   :  { %v307_v33 = vmul.f32 1.442695, %v305_v32 }
 0x244   :  { %v304_v34 = vpop.xlane.xlu0 %303 }
 0x245   :  { %398 = vpow2.f32 %v307_v33  ;;  %v306_v35 = vsub.f32 %v294_v28, %v304_v34 }
 0x247   :  { %v309_v36 = vmul.f32 1.442695, %v306_v35 }
 0x249   :  { %400 = vpow2.f32 %v309_v36 }
 0x24f   :  { %v399_v37 = vpop.eup %398 }
 0x250   :  { %v311_v38 = vsel %vm298_vm3, %v399_v37, 0.0 }
 0x251   :  { %312 = vadd.xlane.f32.xlu1 %v311_v38 }
 0x253   :  { %v401_v39 = vpop.eup %400 }
 0x254   :  { %v314_v40 = vsel %vm298_vm3, %v401_v39, 0.0 }
 0x255   :  { %315 = vadd.xlane.f32.xlu1 %v314_v40 }
 0x2de   :  { %v313_v41 = vpop.xlane.xlu1 %312 }
 0x2df   :  { %402 = vrcp.f32 %v313_v41 }
 0x2e2   :  { %v316_v42 = vpop.xlane.xlu1 %315 }
 0x2e3   :  { %404 = vrcp.f32 %v316_v42 }
 0x2e9   :  { %v403_v43 = vpop.eup %402 }
 0x2ea   :  { %v318_v44 = vmul.f32 %v403_v43, %v399_v37 }
 0x2ec   :  { %v321_v47 = vsel %vm298_vm3, %v318_v44, 0.0 }
 0x2ed   :  { %v405_v45 = vpop.eup %404 }
 0x2ee   :  { %v320_v46 = vmul.f32 %v405_v45, %v401_v39 }
 0x2f0   :  { %v322_v48 = vsel %vm298_vm3, %v320_v46, 0.0 }
 0x2f1   :  { %v323_v49 = vadd.f32 %v322_v48, %v321_v47 }
 0x2f3   :  { %324 = vadd.xlane.f32.xlu0 %v323_v49 }
 0x380   :  { %v325_v50 = vpop.xlane.xlu0 %324 }
 0x381   :  { %v326_v51 = vrot.slane %v325_v50, 4 }
 0x383   :  { %v327_v52 = vadd.f32 %v326_v51, %v325_v50 }
 0x385   :  { %v328_v53 = vrot.slane %v327_v52, 2 }
 0x387   :  { %v329_v54 = vadd.f32 %v328_v53, %v327_v52 }
 0x389   :  { %v330_v55 = vrot.slane %v329_v54, 1 }
 0x38b   :  { %v331_v56 = vadd.f32 %v330_v55, %v329_v54 }
 0x38d   :  { %389 = vpush %v331_v56 }
 0x3be   :  { %s390_s0 = spop %389 }
 0x3bf   :  { %s333_s1 = smul.f32 0.0078125, %s390_s0 }
 0x3c1   :  { %335 = sst [smem:[#allocation2]] %s333_s1 }
 0x3c2   :  { %415 = shalt.err (!%p412_p2)
}
 0x3c3   :  { %s420_s28 = smov [#allocation2]  }
 0x3c4   :  { %343 = dma.smem_to_hbm %s420_s28, 16, %s477_s3, [#allocation3]  }
 0x3c5   :  { %416 = dma.done.wait [#allocation3], 16  }
 0x3c6   :  { %417 = vsyncadd [#allocation3], 4294967280 }
 0x3c7   :  { %347 = sfence }
 0x3c8   :  { %348 = vsyncpa [#allocation3], 1 }

</bundles_post_ra>
